<compile_context>
chip_gen: v7x
topology: tpu7x:2x2x1
jax: 0.10.0
libtpu: 0.0.40
codegen_flags: <defaults>
</compile_context>

<pallas_src>
import functools

import jax
import jax.numpy as jnp
from jax import lax
from jax.experimental import pallas as pl
from jax.experimental.pallas import tpu as pltpu

LN_EPS = 1e-5                     # PyTorch nn.LayerNorm default
_INV_SQRT2 = 0.7071067811865476


def _feature_map(t):
    # exact (erf) GELU + 1, matching torch.nn.functional.gelu default.
    # TODO(synk): tanh-approx GELU would move this polynomial onto the EUP slot
    # (~free) at the cost of ~1e-3 deviation from the erf-based PyTorch reference.
    return 0.5 * t * (1.0 + lax.erf(t * _INV_SQRT2)) + 1.0


def _reciprocal(d):
    # EUP approx reciprocal + 2 Newton-Raphson refinements (VALU; the operand is
    # only (b_blk, 1, L), so this is free) -> matches exact divide within 1e-7.
    r = pl.reciprocal(d, approx=True)
    r = r * (2.0 - d * r)
    r = r * (2.0 - d * r)
    return r


def _global_dot_attention(q_in, k_in, v, inv_scaling):
    q = _feature_map(q_in)
    k = _feature_map(k_in)
    # energy = sum_seq(q*k) * q / sqrt(E); softmax over the seq axis (axis=1 -> sublanes).
    energy = jnp.sum(q * k, axis=1, keepdims=True) * q * inv_scaling
    m = jnp.max(energy, axis=1, keepdims=True)
    e = jnp.exp(energy - m)
    denom = jnp.sum(e, axis=1, keepdims=True)
    return e * _reciprocal(denom) * v


def _layernorm(t, gamma, beta, seg, fold, embed):
    if fold == 1:
        mean = jnp.mean(t, axis=-1, keepdims=True)
        var = jnp.mean((t - mean) ** 2, axis=-1, keepdims=True)
    else:
        # Lane-packed layout: each vreg row holds `fold` batch rows of E features.
        # Segmented lane mean/var via a block-diagonal ones matmul on the idle MXU;
        # the result is the per-group statistic broadcast back over its E lanes,
        # and segments never mix (safe for padded partial blocks).
        inv_e = 1.0 / float(embed)
        shp = t.shape
        L = shp[-1]

        def seg_mean(u):
            u2 = u.reshape(-1, L)                                     # (b_blk*S, L)
            s = jnp.dot(u2, seg, preferred_element_type=jnp.float32)  # segmented lane sums
            return (s * inv_e).reshape(shp)

        mean = seg_mean(t)
        var = seg_mean((t - mean) ** 2)
    return (t - mean) * lax.rsqrt(var + LN_EPS) * gamma + beta


def decoder_block_kernel(seg_ref, x_ref, k1_ref, v1_ref, k2_ref, v2_ref,
                         g1_ref, b1_ref, g2_ref, b2_ref, out_ref,
                         *, fold, embed):
    inv_scaling = float(embed) ** -0.5      # constant-folded, no in-kernel divide
    seg = seg_ref[...] if fold > 1 else None

    # TODO(synk): if I/O can be bf16, keep the elementwise pipeline in bf16 on
    # v6e/v7x (cast only LN/softmax statistics to f32); here I/O is f32.
    x = x_ref[...].astype(jnp.float32)      # (b_blk, S, fold*E)
    k1 = k1_ref[...].astype(jnp.float32)
    v1 = v1_ref[...].astype(jnp.float32)
    g1 = g1_ref[...].astype(jnp.float32)    # (1, fold*E)
    b1 = b1_ref[...].astype(jnp.float32)

    # SelfAttention(x, key1, value1) + residual + LayerNorm
    att1 = _global_dot_attention(x, k1, v1, inv_scaling)
    # TODO(synk): nn.Dropout omitted (identity in inference mode)
    query = _layernorm(att1 + x, g1, b1, seg, fold, embed)

    k2 = k2_ref[...].astype(jnp.float32)
    v2 = v2_ref[...].astype(jnp.float32)
    g2 = g2_ref[...].astype(jnp.float32)
    b2 = b2_ref[...].astype(jnp.float32)

    # TransformerBlock: CrossAttention(query, key2, value2) + residual + LayerNorm
    att2 = _global_dot_attention(query, k2, v2, inv_scaling)
    out = _layernorm(att2 + query, g2, b2, seg, fold, embed)

    out_ref[...] = out.astype(out_ref.dtype)


def _tpu_config():
    """(num_tensorcores, vmem_limit_bytes, vmem_budget_for_blocking) by chip generation."""
    kind = ""
    try:
        kind = jax.devices()[0].device_kind.lower()
    except Exception:
        pass
    if "v7" in kind:
        # 2 TCs/chip, 64 MiB VMEM per TC -> keep limit under physical with headroom.
        return 2, 56 * 2**20, 36 * 2**20
    if ("v6" in kind) or ("v5e" in kind) or ("v5 lite" in kind) or ("v5lite" in kind):
        # 1 TC/chip, 128 MiB physical VMEM (default scoped limit is only 16/32 MiB).
        return 1, 96 * 2**20, 72 * 2**20
    # Unknown chip: conservative defaults.
    return 1, 48 * 2**20, 32 * 2**20


def decoder_block(x, key1, value1, key2, value2, gamma1, beta1, gamma2, beta2,
                  *, b_blk=None, vmem_limit_bytes=None):
    B, S, E = x.shape
    itemsize = x.dtype.itemsize

    # ---- lane-density repack: fold batch rows into the 128-lane axis ---------
    # Gated on S % 8 == 0 so the in-kernel (b_blk, S, L) <-> (b_blk*S, L) reshapes
    # stay layout-trivial. TODO(synk): pad B when no suitable divisor exists.
    fold = 1
    if E < 128 and S % 8 == 0:
        for f in range(min(max(1, 128 // E), B), 0, -1):
            if B % f == 0:
                fold = f
                break
    L = fold * E
    Bf = B // fold

    num_tc, vmem_default, budget = _tpu_config()
    if vmem_limit_bytes is None:
        vmem_limit_bytes = vmem_default

    # ---- block size ----------------------------------------------------------
    if b_blk is None:
        slab = S * L * 4
        # 6 inputs x2 + 1 output x2 = 14 double-buffered block buffers plus a few
        # live f32 compute temps after compiler reuse -> divisor 16 (the previous
        # 20 was over-conservative and shrank b_blk unnecessarily on v7x).
        b_blk = max(1, budget // (16 * slab))
    b_blk = int(min(b_blk, Bf))

    # Split across TensorCores only on multi-TC chips (v7x) and only when each
    # half is big enough (>= 256 KiB of output per TC) to beat the extra
    # per-step fixed cost; single-TC chips (v5e/v6e) keep one big block.
    if num_tc > 1 and b_blk >= Bf and Bf > 1:
        half = pl.cdiv(Bf, 2)
        if half * S * L * itemsize >= 256 * 1024:
            b_blk = half

    grid = (pl.cdiv(Bf, b_blk),)

    # ---- wrapper-side layout plumbing (lane-dense slabs) ---------------------
    def pack(t):
        if fold == 1:
            return t
        return t.reshape(Bf, fold, S, E).transpose(0, 2, 1, 3).reshape(Bf, S, L)

    def prep_param(p):
        p = jnp.reshape(p, (1, E))
        return jnp.tile(p, (1, fold)) if fold > 1 else p

    if fold > 1:
        lane_grp = jnp.arange(L) // E
        seg = (lane_grp[:, None] == lane_grp[None, :]).astype(jnp.float32)  # (L, L)
    else:
        seg = jnp.zeros((8, 128), jnp.float32)  # unused placeholder

    xp, k1p, v1p, k2p, v2p = (pack(t) for t in (x, key1, value1, key2, value2))
    g1p, b1p, g2p, b2p = (prep_param(p) for p in (gamma1, beta1, gamma2, beta2))

    seq_spec = pl.BlockSpec((b_blk, S, L), lambda b: (b, 0, 0))
    par_spec = pl.BlockSpec((1, L), lambda b: (0, 0))      # grid-invariant / resident
    seg_spec = pl.BlockSpec(seg.shape, lambda b: (0, 0))

    n_elem = B * S * E
    cost = pl.CostEstimate(
        flops=int(60 * n_elem + (8 * n_elem * L if fold > 1 else 0)),
        transcendentals=int(6 * n_elem),
        bytes_accessed=int(7 * n_elem * itemsize),
    )

    out_packed = pl.pallas_call(
        functools.partial(decoder_block_kernel, fold=fold, embed=E),
        out_shape=jax.ShapeDtypeStruct((Bf, S, L), x.dtype),
        grid_spec=pltpu.PrefetchScalarGridSpec(
            num_scalar_prefetch=0,
            grid=grid,
            in_specs=[seg_spec, seq_spec, seq_spec, seq_spec, seq_spec, seq_spec,
                      par_spec, par_spec, par_spec, par_spec],
            out_specs=seq_spec,
        ),
        compiler_params=pltpu.CompilerParams(
            dimension_semantics=("parallel",),
            vmem_limit_bytes=int(vmem_limit_bytes),
        ),
        cost_estimate=cost,
    )(seg, xp, k1p, v1p, k2p, v2p, g1p, b1p, g2p, b2p)

    if fold == 1:
        return out_packed
    return out_packed.reshape(Bf, S, fold, E).transpose(0, 2, 1, 3).reshape(B, S, E)


# ----------------------------- pure-JAX reference ------------------------------
def _layernorm_ref(t, gamma, beta):
    mean = jnp.mean(t, axis=-1, keepdims=True)
    var = jnp.mean((t - mean) ** 2, axis=-1, keepdims=True)
    return (t - mean) * lax.rsqrt(var + LN_EPS) * gamma + beta


def decoder_block_ref(x, key1, value1, key2, value2, gamma1, beta1, gamma2, beta2):
    E = x.shape[-1]
    scaling = jnp.float32(E) ** 0.5

    def attn(q_in, k_in, v):
        q = _feature_map(q_in)
        k = _feature_map(k_in)
        energy = jnp.sum(q * k, axis=1, keepdims=True) * q / scaling
        return jax.nn.softmax(energy, axis=1) * v

    a1 = attn(x, key1, value1)
    query = _layernorm_ref(a1 + x, gamma1[None, :, :], beta1[None, :, :])
    a2 = attn(query, key2, value2)
    return _layernorm_ref(a2 + query, gamma2[None, :, :], beta2[None, :, :])


if __name__ == "__main__":
    B, S, E = 2, 8, 32  # batch, seq, embed
    key = jax.random.PRNGKey(0)
    ks = jax.random.split(key, 9)

    x = jax.random.normal(ks[0], (B, S, E), dtype=jnp.float32)
    key1 = jax.random.normal(ks[1], (B, S, E), dtype=jnp.float32)
    value1 = jax.random.normal(ks[2], (B, S, E), dtype=jnp.float32)
    key2 = jax.random.normal(ks[3], (B, S, E), dtype=jnp.float32)
    value2 = jax.random.normal(ks[4], (B, S, E), dtype=jnp.float32)

    # LayerNorm params (PyTorch default: weight=1, bias=0; perturbed deterministically)
    gamma1 = 1.0 + 0.1 * jax.random.normal(ks[5], (1, E), dtype=jnp.float32)
    beta1 = 0.1 * jax.random.normal(ks[6], (1, E), dtype=jnp.float32)
    gamma2 = 1.0 + 0.1 * jax.random.normal(ks[7], (1, E), dtype=jnp.float32)
    beta2 = 0.1 * jax.random.normal(ks[8], (1, E), dtype=jnp.float32)

    out = decoder_block(x, key1, value1, key2, value2,
                        gamma1, beta1, gamma2, beta2)
    out = jax.block_until_ready(out)

    ref = decoder_block_ref(x, key1, value1, key2, value2,
                            gamma1, beta1, gamma2, beta2)
    assert out.shape == (B, S, E)
    assert jnp.allclose(out, ref, atol=1e-5, rtol=1e-5), "mismatch vs JAX reference"

    print("KERNEL_OK")
</pallas_src>

<mosaic_0001>
module attributes {stable_mosaic.version = 11 : i64} {
  func.func @decoder_block_kernel(%arg0: i32, %arg1: memref<64x64xf32, #tpu.memory_space<vmem>>, %arg2: memref<1x8x64xf32, #tpu.memory_space<vmem>>, %arg3: memref<1x8x64xf32, #tpu.memory_space<vmem>>, %arg4: memref<1x8x64xf32, #tpu.memory_space<vmem>>, %arg5: memref<1x8x64xf32, #tpu.memory_space<vmem>>, %arg6: memref<1x8x64xf32, #tpu.memory_space<vmem>>, %arg7: memref<1x64xf32, #tpu.memory_space<vmem>>, %arg8: memref<1x64xf32, #tpu.memory_space<vmem>>, %arg9: memref<1x64xf32, #tpu.memory_space<vmem>>, %arg10: memref<1x64xf32, #tpu.memory_space<vmem>>, %arg11: memref<1x8x64xf32, #tpu.memory_space<vmem>>) attributes {dimension_semantics = [#tpu.dimension_semantics<parallel>], iteration_bounds = array<i64: 1>, scalar_prefetch = 0 : i64, scratch_operands = 0 : i64, tpu.core_type = #tpu.core_type<tc>, window_params = [{pipeline_mode = #tpu.pipeline_mode<synchronous>, transform_indices = @transform_0, window_bounds = array<i64: 64, 64>}, {transform_indices = @transform_1, window_bounds = array<i64: 1, 8, 64>}, {transform_indices = @transform_2, window_bounds = array<i64: 1, 8, 64>}, {transform_indices = @transform_3, window_bounds = array<i64: 1, 8, 64>}, {transform_indices = @transform_4, window_bounds = array<i64: 1, 8, 64>}, {transform_indices = @transform_5, window_bounds = array<i64: 1, 8, 64>}, {pipeline_mode = #tpu.pipeline_mode<synchronous>, transform_indices = @transform_6, window_bounds = array<i64: 1, 64>}, {pipeline_mode = #tpu.pipeline_mode<synchronous>, transform_indices = @transform_7, window_bounds = array<i64: 1, 64>}, {pipeline_mode = #tpu.pipeline_mode<synchronous>, transform_indices = @transform_8, window_bounds = array<i64: 1, 64>}, {pipeline_mode = #tpu.pipeline_mode<synchronous>, transform_indices = @transform_9, window_bounds = array<i64: 1, 64>}, {transform_indices = @transform_10, window_bounds = array<i64: 1, 8, 64>}]} {
    %c0 = arith.constant 0 : index
    %c0_0 = arith.constant 0 : index
    %0 = vector.load %arg1[%c0, %c0_0] : memref<64x64xf32, #tpu.memory_space<vmem>>, vector<64x64xf32>
    %c0_1 = arith.constant 0 : index
    %c0_2 = arith.constant 0 : index
    %c0_3 = arith.constant 0 : index
    %1 = vector.load %arg2[%c0_1, %c0_2, %c0_3] : memref<1x8x64xf32, #tpu.memory_space<vmem>>, vector<1x8x64xf32>
    %c0_4 = arith.constant 0 : index
    %c0_5 = arith.constant 0 : index
    %c0_6 = arith.constant 0 : index
    %2 = vector.load %arg3[%c0_4, %c0_5, %c0_6] : memref<1x8x64xf32, #tpu.memory_space<vmem>>, vector<1x8x64xf32>
    %c0_7 = arith.constant 0 : index
    %c0_8 = arith.constant 0 : index
    %c0_9 = arith.constant 0 : index
    %3 = vector.load %arg4[%c0_7, %c0_8, %c0_9] : memref<1x8x64xf32, #tpu.memory_space<vmem>>, vector<1x8x64xf32>
    %c0_10 = arith.constant 0 : index
    %c0_11 = arith.constant 0 : index
    %4 = vector.load %arg7[%c0_10, %c0_11] : memref<1x64xf32, #tpu.memory_space<vmem>>, vector<1x64xf32>
    %c0_12 = arith.constant 0 : index
    %c0_13 = arith.constant 0 : index
    %5 = vector.load %arg8[%c0_12, %c0_13] : memref<1x64xf32, #tpu.memory_space<vmem>>, vector<1x64xf32>
    %cst = arith.constant 5.000000e-01 : f32
    %6 = vector.broadcast %cst : f32 to vector<1x8x64xf32>
    %7 = arith.mulf %6, %1 : vector<1x8x64xf32>
    %cst_14 = arith.constant 0.707106769 : f32
    %8 = vector.broadcast %cst_14 : f32 to vector<1x8x64xf32>
    %9 = arith.mulf %1, %8 : vector<1x8x64xf32>
    %10 = math.erf %9 : vector<1x8x64xf32>
    %cst_15 = arith.constant 1.000000e+00 : f32
    %11 = vector.broadcast %cst_15 : f32 to vector<1x8x64xf32>
    %12 = arith.addf %11, %10 : vector<1x8x64xf32>
    %13 = arith.mulf %7, %12 : vector<1x8x64xf32>
    %cst_16 = arith.constant 1.000000e+00 : f32
    %14 = vector.broadcast %cst_16 : f32 to vector<1x8x64xf32>
    %15 = arith.addf %13, %14 : vector<1x8x64xf32>
    %cst_17 = arith.constant 5.000000e-01 : f32
    %16 = vector.broadcast %cst_17 : f32 to vector<1x8x64xf32>
    %17 = arith.mulf %16, %2 : vector<1x8x64xf32>
    %cst_18 = arith.constant 0.707106769 : f32
    %18 = vector.broadcast %cst_18 : f32 to vector<1x8x64xf32>
    %19 = arith.mulf %2, %18 : vector<1x8x64xf32>
    %20 = math.erf %19 : vector<1x8x64xf32>
    %cst_19 = arith.constant 1.000000e+00 : f32
    %21 = vector.broadcast %cst_19 : f32 to vector<1x8x64xf32>
    %22 = arith.addf %21, %20 : vector<1x8x64xf32>
    %23 = arith.mulf %17, %22 : vector<1x8x64xf32>
    %cst_20 = arith.constant 1.000000e+00 : f32
    %24 = vector.broadcast %cst_20 : f32 to vector<1x8x64xf32>
    %25 = arith.addf %23, %24 : vector<1x8x64xf32>
    %26 = arith.mulf %15, %25 : vector<1x8x64xf32>
    %cst_21 = arith.constant dense<0.000000e+00> : vector<1x64xf32>
    %27 = vector.multi_reduction <add>, %26, %cst_21 [1] : vector<1x8x64xf32> to vector<1x64xf32>
    %28 = vector.shape_cast %27 : vector<1x64xf32> to vector<1x1x64xf32>
    %29 = vector.broadcast %28 : vector<1x1x64xf32> to vector<1x8x64xf32>
    %30 = arith.mulf %29, %15 : vector<1x8x64xf32>
    %cst_22 = arith.constant 0.176776692 : f32
    %31 = vector.broadcast %cst_22 : f32 to vector<1x8x64xf32>
    %32 = arith.mulf %30, %31 : vector<1x8x64xf32>
    %cst_23 = arith.constant dense<0xFF800000> : vector<1x64xf32>
    %33 = vector.multi_reduction <maximumf>, %32, %cst_23 [1] : vector<1x8x64xf32> to vector<1x64xf32>
    %34 = vector.shape_cast %33 : vector<1x64xf32> to vector<1x1x64xf32>
    %35 = vector.broadcast %34 : vector<1x1x64xf32> to vector<1x8x64xf32>
    %36 = arith.subf %32, %35 : vector<1x8x64xf32>
    %37 = math.exp %36 : vector<1x8x64xf32>
    %cst_24 = arith.constant dense<0.000000e+00> : vector<1x64xf32>
    %38 = vector.multi_reduction <add>, %37, %cst_24 [1] : vector<1x8x64xf32> to vector<1x64xf32>
    %39 = vector.shape_cast %38 : vector<1x64xf32> to vector<1x1x64xf32>
    %40 = tpu.reciprocal %39 {approx = true} : vector<1x1x64xf32> -> vector<1x1x64xf32>
    %41 = arith.mulf %39, %40 : vector<1x1x64xf32>
    %cst_25 = arith.constant 2.000000e+00 : f32
    %42 = vector.broadcast %cst_25 : f32 to vector<1x1x64xf32>
    %43 = arith.subf %42, %41 : vector<1x1x64xf32>
    %44 = arith.mulf %40, %43 : vector<1x1x64xf32>
    %45 = arith.mulf %39, %44 : vector<1x1x64xf32>
    %cst_26 = arith.constant 2.000000e+00 : f32
    %46 = vector.broadcast %cst_26 : f32 to vector<1x1x64xf32>
    %47 = arith.subf %46, %45 : vector<1x1x64xf32>
    %48 = arith.mulf %44, %47 : vector<1x1x64xf32>
    %49 = vector.broadcast %48 : vector<1x1x64xf32> to vector<1x8x64xf32>
    %50 = arith.mulf %37, %49 : vector<1x8x64xf32>
    %51 = arith.mulf %50, %3 : vector<1x8x64xf32>
    %52 = arith.addf %51, %1 : vector<1x8x64xf32>
    %53 = vector.shape_cast %52 : vector<1x8x64xf32> to vector<8x64xf32>
    %cst_27 = arith.constant dense<0.000000e+00> : vector<8x64xf32>
    %54 = tpu.matmul %53, %0, %cst_27 {dimension_numbers = #tpu.dot_dimension_numbers<[1], [0], [0], [1], [0, 0, 1, 1], [], []>} : vector<8x64xf32>, vector<64x64xf32>, vector<8x64xf32> -> vector<8x64xf32>
    %cst_28 = arith.constant 3.125000e-02 : f32
    %55 = vector.broadcast %cst_28 : f32 to vector<8x64xf32>
    %56 = arith.mulf %54, %55 : vector<8x64xf32>
    %57 = vector.shape_cast %56 : vector<8x64xf32> to vector<1x8x64xf32>
    %58 = arith.subf %52, %57 : vector<1x8x64xf32>
    %59 = arith.mulf %58, %58 : vector<1x8x64xf32>
    %60 = vector.shape_cast %59 : vector<1x8x64xf32> to vector<8x64xf32>
    %cst_29 = arith.constant dense<0.000000e+00> : vector<8x64xf32>
    %61 = tpu.matmul %60, %0, %cst_29 {dimension_numbers = #tpu.dot_dimension_numbers<[1], [0], [0], [1], [0, 0, 1, 1], [], []>} : vector<8x64xf32>, vector<64x64xf32>, vector<8x64xf32> -> vector<8x64xf32>
    %cst_30 = arith.constant 3.125000e-02 : f32
    %62 = vector.broadcast %cst_30 : f32 to vector<8x64xf32>
    %63 = arith.mulf %61, %62 : vector<8x64xf32>
    %64 = vector.shape_cast %63 : vector<8x64xf32> to vector<1x8x64xf32>
    %65 = arith.subf %52, %57 : vector<1x8x64xf32>
    %cst_31 = arith.constant 9.99999974E-6 : f32
    %66 = vector.broadcast %cst_31 : f32 to vector<1x8x64xf32>
    %67 = arith.addf %64, %66 : vector<1x8x64xf32>
    %68 = math.rsqrt %67 : vector<1x8x64xf32>
    %69 = arith.mulf %65, %68 : vector<1x8x64xf32>
    %70 = vector.shape_cast %4 : vector<1x64xf32> to vector<1x1x64xf32>
    %71 = vector.broadcast %70 : vector<1x1x64xf32> to vector<1x8x64xf32>
    %72 = arith.mulf %69, %71 : vector<1x8x64xf32>
    %73 = vector.shape_cast %5 : vector<1x64xf32> to vector<1x1x64xf32>
    %74 = vector.broadcast %73 : vector<1x1x64xf32> to vector<1x8x64xf32>
    %75 = arith.addf %72, %74 : vector<1x8x64xf32>
    %c0_32 = arith.constant 0 : index
    %c0_33 = arith.constant 0 : index
    %c0_34 = arith.constant 0 : index
    %76 = vector.load %arg5[%c0_32, %c0_33, %c0_34] : memref<1x8x64xf32, #tpu.memory_space<vmem>>, vector<1x8x64xf32>
    %c0_35 = arith.constant 0 : index
    %c0_36 = arith.constant 0 : index
    %c0_37 = arith.constant 0 : index
    %77 = vector.load %arg6[%c0_35, %c0_36, %c0_37] : memref<1x8x64xf32, #tpu.memory_space<vmem>>, vector<1x8x64xf32>
    %c0_38 = arith.constant 0 : index
    %c0_39 = arith.constant 0 : index
    %78 = vector.load %arg9[%c0_38, %c0_39] : memref<1x64xf32, #tpu.memory_space<vmem>>, vector<1x64xf32>
    %c0_40 = arith.constant 0 : index
    %c0_41 = arith.constant 0 : index
    %79 = vector.load %arg10[%c0_40, %c0_41] : memref<1x64xf32, #tpu.memory_space<vmem>>, vector<1x64xf32>
    %cst_42 = arith.constant 5.000000e-01 : f32
    %80 = vector.broadcast %cst_42 : f32 to vector<1x8x64xf32>
    %81 = arith.mulf %80, %75 : vector<1x8x64xf32>
    %cst_43 = arith.constant 0.707106769 : f32
    %82 = vector.broadcast %cst_43 : f32 to vector<1x8x64xf32>
    %83 = arith.mulf %75, %82 : vector<1x8x64xf32>
    %84 = math.erf %83 : vector<1x8x64xf32>
    %cst_44 = arith.constant 1.000000e+00 : f32
    %85 = vector.broadcast %cst_44 : f32 to vector<1x8x64xf32>
    %86 = arith.addf %85, %84 : vector<1x8x64xf32>
    %87 = arith.mulf %81, %86 : vector<1x8x64xf32>
    %cst_45 = arith.constant 1.000000e+00 : f32
    %88 = vector.broadcast %cst_45 : f32 to vector<1x8x64xf32>
    %89 = arith.addf %87, %88 : vector<1x8x64xf32>
    %cst_46 = arith.constant 5.000000e-01 : f32
    %90 = vector.broadcast %cst_46 : f32 to vector<1x8x64xf32>
    %91 = arith.mulf %90, %76 : vector<1x8x64xf32>
    %cst_47 = arith.constant 0.707106769 : f32
    %92 = vector.broadcast %cst_47 : f32 to vector<1x8x64xf32>
    %93 = arith.mulf %76, %92 : vector<1x8x64xf32>
    %94 = math.erf %93 : vector<1x8x64xf32>
    %cst_48 = arith.constant 1.000000e+00 : f32
    %95 = vector.broadcast %cst_48 : f32 to vector<1x8x64xf32>
    %96 = arith.addf %95, %94 : vector<1x8x64xf32>
    %97 = arith.mulf %91, %96 : vector<1x8x64xf32>
    %cst_49 = arith.constant 1.000000e+00 : f32
    %98 = vector.broadcast %cst_49 : f32 to vector<1x8x64xf32>
    %99 = arith.addf %97, %98 : vector<1x8x64xf32>
    %100 = arith.mulf %89, %99 : vector<1x8x64xf32>
    %cst_50 = arith.constant dense<0.000000e+00> : vector<1x64xf32>
    %101 = vector.multi_reduction <add>, %100, %cst_50 [1] : vector<1x8x64xf32> to vector<1x64xf32>
    %102 = vector.shape_cast %101 : vector<1x64xf32> to vector<1x1x64xf32>
    %103 = vector.broadcast %102 : vector<1x1x64xf32> to vector<1x8x64xf32>
    %104 = arith.mulf %103, %89 : vector<1x8x64xf32>
    %cst_51 = arith.constant 0.176776692 : f32
    %105 = vector.broadcast %cst_51 : f32 to vector<1x8x64xf32>
    %106 = arith.mulf %104, %105 : vector<1x8x64xf32>
    %cst_52 = arith.constant dense<0xFF800000> : vector<1x64xf32>
    %107 = vector.multi_reduction <maximumf>, %106, %cst_52 [1] : vector<1x8x64xf32> to vector<1x64xf32>
    %108 = vector.shape_cast %107 : vector<1x64xf32> to vector<1x1x64xf32>
    %109 = vector.broadcast %108 : vector<1x1x64xf32> to vector<1x8x64xf32>
    %110 = arith.subf %106, %109 : vector<1x8x64xf32>
    %111 = math.exp %110 : vector<1x8x64xf32>
    %cst_53 = arith.constant dense<0.000000e+00> : vector<1x64xf32>
    %112 = vector.multi_reduction <add>, %111, %cst_53 [1] : vector<1x8x64xf32> to vector<1x64xf32>
    %113 = vector.shape_cast %112 : vector<1x64xf32> to vector<1x1x64xf32>
    %114 = tpu.reciprocal %113 {approx = true} : vector<1x1x64xf32> -> vector<1x1x64xf32>
    %115 = arith.mulf %113, %114 : vector<1x1x64xf32>
    %cst_54 = arith.constant 2.000000e+00 : f32
    %116 = vector.broadcast %cst_54 : f32 to vector<1x1x64xf32>
    %117 = arith.subf %116, %115 : vector<1x1x64xf32>
    %118 = arith.mulf %114, %117 : vector<1x1x64xf32>
    %119 = arith.mulf %113, %118 : vector<1x1x64xf32>
    %cst_55 = arith.constant 2.000000e+00 : f32
    %120 = vector.broadcast %cst_55 : f32 to vector<1x1x64xf32>
    %121 = arith.subf %120, %119 : vector<1x1x64xf32>
    %122 = arith.mulf %118, %121 : vector<1x1x64xf32>
    %123 = vector.broadcast %122 : vector<1x1x64xf32> to vector<1x8x64xf32>
    %124 = arith.mulf %111, %123 : vector<1x8x64xf32>
    %125 = arith.mulf %124, %77 : vector<1x8x64xf32>
    %126 = arith.addf %125, %75 : vector<1x8x64xf32>
    %127 = vector.shape_cast %126 : vector<1x8x64xf32> to vector<8x64xf32>
    %cst_56 = arith.constant dense<0.000000e+00> : vector<8x64xf32>
    %128 = tpu.matmul %127, %0, %cst_56 {dimension_numbers = #tpu.dot_dimension_numbers<[1], [0], [0], [1], [0, 0, 1, 1], [], []>} : vector<8x64xf32>, vector<64x64xf32>, vector<8x64xf32> -> vector<8x64xf32>
    %cst_57 = arith.constant 3.125000e-02 : f32
    %129 = vector.broadcast %cst_57 : f32 to vector<8x64xf32>
    %130 = arith.mulf %128, %129 : vector<8x64xf32>
    %131 = vector.shape_cast %130 : vector<8x64xf32> to vector<1x8x64xf32>
    %132 = arith.subf %126, %131 : vector<1x8x64xf32>
    %133 = arith.mulf %132, %132 : vector<1x8x64xf32>
    %134 = vector.shape_cast %133 : vector<1x8x64xf32> to vector<8x64xf32>
    %cst_58 = arith.constant dense<0.000000e+00> : vector<8x64xf32>
    %135 = tpu.matmul %134, %0, %cst_58 {dimension_numbers = #tpu.dot_dimension_numbers<[1], [0], [0], [1], [0, 0, 1, 1], [], []>} : vector<8x64xf32>, vector<64x64xf32>, vector<8x64xf32> -> vector<8x64xf32>
    %cst_59 = arith.constant 3.125000e-02 : f32
    %136 = vector.broadcast %cst_59 : f32 to vector<8x64xf32>
    %137 = arith.mulf %135, %136 : vector<8x64xf32>
    %138 = vector.shape_cast %137 : vector<8x64xf32> to vector<1x8x64xf32>
    %139 = arith.subf %126, %131 : vector<1x8x64xf32>
    %cst_60 = arith.constant 9.99999974E-6 : f32
    %140 = vector.broadcast %cst_60 : f32 to vector<1x8x64xf32>
    %141 = arith.addf %138, %140 : vector<1x8x64xf32>
    %142 = math.rsqrt %141 : vector<1x8x64xf32>
    %143 = arith.mulf %139, %142 : vector<1x8x64xf32>
    %144 = vector.shape_cast %78 : vector<1x64xf32> to vector<1x1x64xf32>
    %145 = vector.broadcast %144 : vector<1x1x64xf32> to vector<1x8x64xf32>
    %146 = arith.mulf %143, %145 : vector<1x8x64xf32>
    %147 = vector.shape_cast %79 : vector<1x64xf32> to vector<1x1x64xf32>
    %148 = vector.broadcast %147 : vector<1x1x64xf32> to vector<1x8x64xf32>
    %149 = arith.addf %146, %148 : vector<1x8x64xf32>
    %c0_61 = arith.constant 0 : index
    %c0_62 = arith.constant 0 : index
    %c0_63 = arith.constant 0 : index
    %150 = vector.load %arg11[%c0_61, %c0_62, %c0_63] : memref<1x8x64xf32, #tpu.memory_space<vmem>>, vector<1x8x64xf32>
    tpu.vector_store %arg11[%c0_61, %c0_62, %c0_63], %149 {strides = array<i32>} : memref<1x8x64xf32, #tpu.memory_space<vmem>>, vector<1x8x64xf32>,
    return
  }
  func.func @transform_0(%arg0: i32) -> (i32, i32) {
    %c0_i32 = arith.constant 0 : i32
    %c0_i32_0 = arith.constant 0 : i32
    %c0_i32_1 = arith.constant 0 : i32
    return %c0_i32, %c0_i32_0 : i32, i32
  }
  func.func @transform_1(%arg0: i32) -> (i32, i32, i32) {
    %c0_i32 = arith.constant 0 : i32
    %c0_i32_0 = arith.constant 0 : i32
    %c0_i32_1 = arith.constant 0 : i32
    return %arg0, %c0_i32, %c0_i32_0 : i32, i32, i32
  }
  func.func @transform_2(%arg0: i32) -> (i32, i32, i32) {
    %c0_i32 = arith.constant 0 : i32
    %c0_i32_0 = arith.constant 0 : i32
    %c0_i32_1 = arith.constant 0 : i32
    return %arg0, %c0_i32, %c0_i32_0 : i32, i32, i32
  }
  func.func @transform_3(%arg0: i32) -> (i32, i32, i32) {
    %c0_i32 = arith.constant 0 : i32
    %c0_i32_0 = arith.constant 0 : i32
    %c0_i32_1 = arith.constant 0 : i32
    return %arg0, %c0_i32, %c0_i32_0 : i32, i32, i32
  }
  func.func @transform_4(%arg0: i32) -> (i32, i32, i32) {
    %c0_i32 = arith.constant 0 : i32
    %c0_i32_0 = arith.constant 0 : i32
    %c0_i32_1 = arith.constant 0 : i32
    return %arg0, %c0_i32, %c0_i32_0 : i32, i32, i32
  }
  func.func @transform_5(%arg0: i32) -> (i32, i32, i32) {
    %c0_i32 = arith.constant 0 : i32
    %c0_i32_0 = arith.constant 0 : i32
    %c0_i32_1 = arith.constant 0 : i32
    return %arg0, %c0_i32, %c0_i32_0 : i32, i32, i32
  }
  func.func @transform_6(%arg0: i32) -> (i32, i32) {
    %c0_i32 = arith.constant 0 : i32
    %c0_i32_0 = arith.constant 0 : i32
    %c0_i32_1 = arith.constant 0 : i32
    return %c0_i32, %c0_i32_0 : i32, i32
  }
  func.func @transform_7(%arg0: i32) -> (i32, i32) {
    %c0_i32 = arith.constant 0 : i32
    %c0_i32_0 = arith.constant 0 : i32
    %c0_i32_1 = arith.constant 0 : i32
    return %c0_i32, %c0_i32_0 : i32, i32
  }
  func.func @transform_8(%arg0: i32) -> (i32, i32) {
    %c0_i32 = arith.constant 0 : i32
    %c0_i32_0 = arith.constant 0 : i32
    %c0_i32_1 = arith.constant 0 : i32
    return %c0_i32, %c0_i32_0 : i32, i32
  }
  func.func @transform_9(%arg0: i32) -> (i32, i32) {
    %c0_i32 = arith.constant 0 : i32
    %c0_i32_0 = arith.constant 0 : i32
    %c0_i32_1 = arith.constant 0 : i32
    return %c0_i32, %c0_i32_0 : i32, i32
  }
  func.func @transform_10(%arg0: i32) -> (i32, i32, i32) {
    %c0_i32 = arith.constant 0 : i32
    %c0_i32_0 = arith.constant 0 : i32
    %c0_i32_1 = arith.constant 0 : i32
    return %arg0, %c0_i32, %c0_i32_0 : i32, i32, i32
  }
}

</mosaic_0001>

<bundles_post_ra>
// kernel: tpu_custom_call.1
= control target key start
LH: loop header
LB: loop body
LE: loop exit
PB: predicated region body
PF: predicated region fallthrough
CT: control target
= control target key end

     0   :  { %15 = vsyncpa [#allocation3], 0  ;;  %s1083_s0 = inlined_call_operand.hbm [shape: f32[64,64], index: 0, kind: input, shape index: {}]   ;;  %s1084_s1 = inlined_call_operand.hbm [shape: f32[1,8,64], index: 1, kind: input, shape index: {}]   ;;  %s1085_s2 = inlined_call_operand.hbm [shape: f32[1,8,64], index: 2, kind: input, shape index: {}]   ;;  %s1086_s3 = inlined_call_operand.vmem [shape: f32[1,8,64], index: 3, kind: input, shape index: {}]   ;;  %s1087_s4 = inlined_call_operand.hbm [shape: f32[1,8,64], index: 4, kind: input, shape index: {}]   ;;  %s1088_s5 = inlined_call_operand.vmem [shape: f32[1,8,64], index: 5, kind: input, shape index: {}]   ;;  %s1089_s6 = inlined_call_operand.vmem [shape: f32[1,64], index: 6, kind: input, shape index: {}]   ;;  %s1090_s7 = inlined_call_operand.vmem [shape: f32[1,64], index: 7, kind: input, shape index: {}]   ;;  %s1091_s8 = inlined_call_operand.vmem [shape: f32[1,64], index: 8, kind: input, shape index: {}]   ;;  %s1092_s9 = inlined_call_operand.vmem [shape: f32[1,64], index: 9, kind: input, shape index: {}]   ;;  %s1093_s10 = inlined_call_operand.hbm [shape: f32[1,8,64], index: 10, kind: output, shape index: {}]  }
   0x1   :  { %16 = vsyncpa [#allocation6], 0 }
   0x2   :  { %17 = vsyncpa [#allocation9], 0 }
   0x3   :  { %18 = vsyncpa [#allocation4], 0  ;;  %s869_s13 = smov [#allocation5]   ;;  %s870_s15 = smov [#allocation2]  }
   0x4   :  { %s37_s14 = sshll.u32 %s869_s13, 4  ;;  %s24_s16 = sshll.u32 %s870_s15, 4  ;;  %s38_s14 = int_to_ptr.vmem [resolvable:$true] %s37_s14  ;;  %s934_s16 = int_to_ptr.vmem [resolvable:$true] %s24_s16 }
   0x5   :  { %s751_s19 = scalar_lea.hbm %s1084_s1, 128 }
   0x6   :  { %p752_p0 = scmp.ne.s32.totalorder %s1084_s1, %s751_s19  ;;  %p755_p1 = scmp.lt.u32.totalorder %s751_s19, %s1084_s1 }
   0x8   :  { %p757_p2 = pnand %p755_p1, %p752_p0 }
   0xa   :  { %760 = shalt.err (!%p757_p2)
}
   0xb   :  { %s761_s24 = scalar_lea.vmem %s38_s14, 128  ;;  %p766_p4 = scmp.lt.s32.totalorder %s38_s14, %s38_s14 }
   0xc   :  { %p762_p3 = scmp.ne.s32.totalorder %s38_s14, %s761_s24  ;;  %p767_p5 = scmp.lt.s32.totalorder %s761_s24, %s761_s24 }
   0xe   :  { %p768_p6 = por %p767_p5, %p766_p4 }
  0x10   :  { %p769_p7 = pnand %p768_p6, %p762_p3 }
  0x12   :  { %772 = shalt.err (!%p769_p7)
}
  0x13   :  { %40 = dma.hbm_to_vmem [thread:$0]  %s1084_s1, 128, %s38_s14, [#allocation6]  }
  0x14   :  { %s773_s29 = scalar_lea.hbm %s1083_s0, 1024 }
  0x15   :  { %p774_p8 = scmp.ne.s32.totalorder %s1083_s0, %s773_s29  ;;  %p777_p9 = scmp.lt.u32.totalorder %s773_s29, %s1083_s0 }
  0x17   :  { %p779_p10 = pnand %p777_p9, %p774_p8 }
  0x19   :  { %782 = shalt.err (!%p779_p10)
}
  0x1a   :  { %s783_s15 = scalar_lea.vmem %s934_s16, 1024  ;;  %p788_p12 = scmp.lt.s32.totalorder %s934_s16, %s934_s16 }
  0x1b   :  { %p784_p11 = scmp.ne.s32.totalorder %s934_s16, %s783_s15  ;;  %p789_p13 = scmp.lt.s32.totalorder %s783_s15, %s783_s15 }
  0x1d   :  { %p790_p0 = por %p789_p13, %p788_p12 }
  0x1f   :  { %p791_p1 = pnand %p790_p0, %p784_p11 }
  0x21   :  { %794 = shalt.err (!%p791_p1)
}
  0x22   :  { %s871_s1 = smov 128   ;;  %s872_s14 = smov 8  }
  0x23   :  { %30 = dma.hbm_to_vmem [thread:$0]  %s1083_s0, 1024, %s934_s16, [#allocation3], %s871_s1, %s871_s1, %s872_s14  }
  0x24   :  { %s873_s19 = smov [#allocation7]   ;;  %s874_s21 = smov [#allocation8]  }
  0x25   :  { %s47_s20 = sshll.u32 %s873_s19, 4  ;;  %s59_s22 = sshll.u32 %s874_s21, 4  ;;  %s48_s20 = int_to_ptr.vmem [resolvable:$true] %s47_s20  ;;  %s60_s22 = int_to_ptr.vmem [resolvable:$true] %s59_s22 }
  0x26   :  { %s795_s25 = scalar_lea.hbm %s1085_s2, 128 }
  0x27   :  { %p796_p2 = scmp.ne.s32.totalorder %s1085_s2, %s795_s25  ;;  %p799_p3 = scmp.lt.u32.totalorder %s795_s25, %s1085_s2 }
  0x29   :  { %p801_p4 = pnand %p799_p3, %p796_p2 }
  0x2b   :  { %804 = shalt.err (!%p801_p4)
}
  0x2c   :  { %s805_s0 = scalar_lea.vmem %s48_s20, 128  ;;  %p810_p6 = scmp.lt.s32.totalorder %s48_s20, %s48_s20 }
  0x2d   :  { %p806_p5 = scmp.ne.s32.totalorder %s48_s20, %s805_s0  ;;  %p811_p7 = scmp.lt.s32.totalorder %s805_s0, %s805_s0 }
  0x2f   :  { %p812_p8 = por %p811_p7, %p810_p6 }
  0x31   :  { %p813_p9 = pnand %p812_p8, %p806_p5 }
  0x33   :  { %816 = shalt.err (!%p813_p9)
}
  0x34   :  { %50 = dma.hbm_to_vmem [thread:$0]  %s1085_s2, 128, %s48_s20, [#allocation6]  }
  0x35   :  { %s817_s13 = scalar_lea.hbm %s1087_s4, 128 }
  0x36   :  { %p818_p10 = scmp.ne.s32.totalorder %s1087_s4, %s817_s13  ;;  %p821_p11 = scmp.lt.u32.totalorder %s817_s13, %s1087_s4 }
  0x38   :  { %p823_p12 = pnand %p821_p11, %p818_p10 }
  0x3a   :  { %826 = shalt.err (!%p823_p12)
}
  0x3b   :  { %s827_s18 = scalar_lea.vmem %s60_s22, 128  ;;  %p832_p0 = scmp.lt.s32.totalorder %s60_s22, %s60_s22 }
  0x3c   :  { %p828_p13 = scmp.ne.s32.totalorder %s60_s22, %s827_s18  ;;  %p833_p1 = scmp.lt.s32.totalorder %s827_s18, %s827_s18 }
  0x3e   :  { %p834_p2 = por %p833_p1, %p832_p0 }
  0x40   :  { %p835_p3 = pnand %p834_p2, %p828_p13 }
  0x42   :  { %838 = shalt.err (!%p835_p3)
}
  0x43   :  { %62 = dma.hbm_to_vmem [thread:$0]  %s1087_s4, 128, %s60_s22, [#allocation9]  }
  0x44   :  { %861 = dma.done.wait [#allocation3], 1024  }
  0x45   :  { %862 = vsyncadd [#allocation3], 4294966272 }
  0x46   :  { %863 = dma.done.wait [#allocation6], 256  }
  0x47   :  { %864 = vsyncadd [#allocation6], 4294967040 }
  0x48   :  { %865 = dma.done.wait [#allocation9], 128  }
  0x49   :  { %866 = vsyncadd [#allocation9], 4294967168  ;;  %v875_v0 = vmov 0.0|0.0   ;;  %vm876_vm0 = vmmov 0   ;;  %v877_v1 = vmov 0.0   ;;  %v85_v2 = vld [vmem:[#allocation2] sm:$0xff] }
  0x4a   :  { %673 = vmatprep.subr.bf16.mxu0 %v875_v0  ;;  %613 = vmatprep.mubr.msk.f32.mxu0 %vm876_vm0, %v877_v1  ;;  %v86_v3 = vld [vmem:[#allocation2 + $0x8] sm:$0xff]  ;;  %v87_v4 = vld [vmem:[#allocation2 + $0x10] sm:$0xff]  ;;  %v88_v6 = vld [vmem:[#allocation2 + $0x18] sm:$0xff]  ;;  %vm111_vm1 = vcmask 523264   ;;  %s878_s27 = smov [#allocation10]  }
  0x4b   :  { %685 = vmatprep.subr.bf16.mxu1 %v875_v0  ;;  %632 = vmatprep.mubr.msk.f32.mxu1 %vm876_vm0, %v877_v1  ;;  %v995_v5 = vpack.c.bf16 %v86_v3, %v85_v2  ;;  %v997_v7 = vld [vmem:[#allocation5] sm:$0xff]  ;;  %v1000_v8 = vpack.c.bf16 %v88_v6, %v87_v4  ;;  %v94_v9 = vld [vmem:[#allocation7] sm:$0xff]  ;;  %v91_v15 = vld [vmem:[#allocation2 + $0x30] sm:$0xff]  ;;  %s542_s28 = sshll.u32 %s878_s27, 4  ;;  %s543_s28 = int_to_ptr.vmem [resolvable:$true] %s542_s28 }
  0x4c   :  { %v99_v10 = vmul.f32 0.70710677, %v997_v7  ;;  %v89_v11 = vld [vmem:[#allocation2 + $0x20] sm:$0xff]  ;;  %v90_v12 = vld [vmem:[#allocation2 + $0x28] sm:$0xff]  ;;  %v105_v13 = vmul.f32 0.70710677, %v94_v9  ;;  %p844_p5 = scmp.lt.s32.totalorder %s543_s28, %s543_s28 }
  0x4d   :  { %675 = vmatpush3.bf16.msra.mxu0 %v995_v5  ;;  %687 = vmatpush3.bf16.msra.mxu1 %v995_v5  ;;  %v1007_v14 = vpack.c.bf16 %v90_v12, %v89_v11  ;;  %v92_v16 = vld [vmem:[#allocation2 + $0x38] sm:$0xff]  ;;  %v98_v18 = vmul.f32 0.5, %v997_v7  ;;  %v104_v20 = vmul.f32 0.5, %v94_v9  ;;  %v95_v62 = vld [vmem:[%s1086_s3] sm:$0xff]  ;;  %s839_s29 = scalar_lea.vmem %s543_s28, 128 }
  0x4e   :  { %676 = vmatprep.subr.bf16.mxu0 %v875_v0  ;;  %688 = vmatprep.subr.bf16.mxu1 %v875_v0  ;;  %731 = verf.f32 %v99_v10  ;;  %v1013_v17 = vpack.c.bf16 %v92_v16, %v91_v15  ;;  %p840_p4 = scmp.ne.s32.totalorder %s543_s28, %s839_s29  ;;  %p845_p6 = scmp.lt.s32.totalorder %s839_s29, %s839_s29 }
  0x4f   :  { %733 = verf.f32 %v105_v13 }
  0x50   :  { %p846_p7 = por %p845_p6, %p844_p5 }
  0x51   :  { %678 = vmatpush3.bf16.msra.mxu0 %v1000_v8  ;;  %690 = vmatpush3.bf16.msra.mxu1 %v1000_v8 }
  0x52   :  { %679 = vmatprep.subr.bf16.mxu0 %v875_v0  ;;  %691 = vmatprep.subr.bf16.mxu1 %v875_v0  ;;  %p847_p8 = pnand %p846_p7, %p840_p4 }
  0x55   :  { %681 = vmatpush3.bf16.msra.mxu0 %v1007_v14  ;;  %693 = vmatpush3.bf16.msra.mxu1 %v1007_v14 }
  0x56   :  { %682 = vmatprep.subr.bf16.mxu0 %v875_v0  ;;  %694 = vmatprep.subr.bf16.mxu1 %v875_v0 }
  0x58   :  { %v732_v19 = vpop.eup %731 }
  0x59   :  { %684 = vmatpush3.bf16.msra.mxu0 %v1013_v17  ;;  %696 = vmatpush3.bf16.msra.mxu1 %v1013_v17  ;;  %v734_v21 = vpop.eup %733  ;;  %v101_v22 = vadd.f32 1.0, %v732_v19 }
  0x5a   :  { %697 = vmatprep.subr.bf16.mxu0 %v875_v0  ;;  %709 = vmatprep.subr.bf16.mxu1 %v875_v0  ;;  %v107_v23 = vadd.f32 1.0, %v734_v21 }
  0x5b   :  { %v102_v24 = vmul.f32 %v101_v22, %v98_v18 }
  0x5c   :  { %v108_v25 = vmul.f32 %v107_v23, %v104_v20 }
  0x5d   :  { %v103_v26 = vadd.f32 1.0, %v102_v24 }
  0x5e   :  { %v109_v27 = vadd.f32 1.0, %v108_v25 }
  0x60   :  { %v110_v28 = vmul.f32 %v109_v27, %v103_v26 }
  0x62   :  { %v112_v29 = vsel %vm111_vm1, %v110_v28, 0.0 }
  0x63   :  { %v113_v30 = vrot.slane %v112_v29, 4 }
  0x65   :  { %v114_v31 = vadd.f32 %v113_v30, %v112_v29 }
  0x67   :  { %v115_v32 = vrot.slane %v114_v31, 2 }
  0x69   :  { %v116_v33 = vadd.f32 %v115_v32, %v114_v31 }
  0x6b   :  { %v117_v34 = vrot.slane %v116_v33, 1 }
  0x6d   :  { %v118_v35 = vadd.f32 %v117_v34, %v116_v33 }
  0x6f   :  { %v119_v36 = vmul.f32 %v118_v35, %v103_v26 }
  0x71   :  { %v120_v37 = vmul.f32 0.17677669, %v119_v36 }
  0x73   :  { %v121_v38 = vsel %vm111_vm1, %v120_v37, -inf }
  0x74   :  { %v122_v39 = vrot.slane %v121_v38, 4 }
  0x76   :  { %v123_v40 = vmax.f32 %v121_v38, %v122_v39 }
  0x78   :  { %v124_v41 = vrot.slane %v123_v40, 2 }
  0x7a   :  { %v125_v42 = vmax.f32 %v123_v40, %v124_v41 }
  0x7c   :  { %v126_v43 = vrot.slane %v125_v42, 1 }
  0x7e   :  { %v127_v44 = vmax.f32 %v125_v42, %v126_v43 }
  0x80   :  { %v128_v45 = vsub.f32 %v120_v37, %v127_v44 }
  0x82   :  { %v129_v46 = vmul.f32 1.442695, %v128_v45 }
  0x84   :  { %735 = vpow2.f32 %v129_v46 }
  0x8e   :  { %v736_v47 = vpop.eup %735 }
  0x8f   :  { %v131_v48 = vsel %vm111_vm1, %v736_v47, 0.0 }
  0x90   :  { %v132_v49 = vrot.slane %v131_v48, 4 }
  0x92   :  { %v133_v50 = vadd.f32 %v132_v49, %v131_v48 }
  0x94   :  { %v134_v51 = vrot.slane %v133_v50, 2 }
  0x96   :  { %v135_v52 = vadd.f32 %v134_v51, %v133_v50 }
  0x98   :  { %v136_v53 = vrot.slane %v135_v52, 1 }
  0x9a   :  { %v137_v54 = vadd.f32 %v136_v53, %v135_v52 }
  0x9c   :  { %737 = vrcp.f32 %v137_v54 }
  0xa6   :  { %v738_v55 = vpop.eup %737 }
  0xa7   :  { %v139_v56 = vmul.f32 %v738_v55, %v137_v54 }
  0xa9   :  { %v140_v57 = vsub.f32 2.0, %v139_v56 }
  0xab   :  { %v141_v58 = vmul.f32 %v738_v55, %v140_v57 }
  0xad   :  { %v142_v59 = vmul.f32 %v141_v58, %v137_v54 }
  0xaf   :  { %v143_v60 = vsub.f32 2.0, %v142_v59 }
  0xb1   :  { %v144_v61 = vmul.f32 %v143_v60, %v141_v58 }
  0xb3   :  { %v145_v63 = vmul.f32 %v736_v47, %v144_v61 }
  0xb5   :  { %v146_v2 = vmul.f32 %v145_v63, %v95_v62 }
  0xb7   :  { %v147_v3 = vadd.f32 %v146_v2, %v997_v7  ;;  %v316_v2 = vld [vmem:[%s1088_s5] sm:$0xff] }
  0xb9   :  { %614 = vmatmul.mubr.msk.f32.vlgmr.msra.gmra.mrb[0].mxu0 %vm111_vm1, %v147_v3 }
  0xba   :  { %699 = vmatpush3.bf16.msra.mxu0 %v995_v5  ;;  %651 = vmatprep.mubr.msk.f32.mxu0 %vm876_vm0, %v877_v1 }
  0xbb   :  { %700 = vmatprep.subr.bf16.mxu0 %v875_v0 }
  0xbe   :  { %702 = vmatpush3.bf16.msra.mxu0 %v1000_v8 }
  0xbf   :  { %703 = vmatprep.subr.bf16.mxu0 %v875_v0 }
  0xc2   :  { %705 = vmatpush3.bf16.msra.mxu0 %v1007_v14 }
  0xc3   :  { %706 = vmatprep.subr.bf16.mxu0 %v875_v0 }
  0xc6   :  { %708 = vmatpush3.bf16.msra.mxu0 %v1013_v17 }
 0x18c   :  { %v217_v4 = vpop.f32.mrb[0].mxu0 }
 0x18d   :  { %v221_v6 = vmul.f32 0.03125, %v217_v4  ;;  %v615_v7 = vpop.f32.mrb[1].mxu0 }
 0x18f   :  { %v222_v9 = vsub.f32 %v147_v3, %v221_v6 }
 0x191   :  { %v223_v10 = vmul.f32 %v222_v9, %v222_v9 }
 0x193   :  { %633 = vmatmul.mubr.msk.f32.vlgmr.msra.gmra.mrb[0].mxu1 %vm111_vm1, %v223_v10 }
 0x194   :  { %711 = vmatpush3.bf16.msra.mxu1 %v995_v5  ;;  %670 = vmatprep.mubr.msk.f32.mxu1 %vm876_vm0, %v877_v1  ;;  %v315_v5 = vld [vmem:[#allocation8] sm:$0xff] }
 0x195   :  { %712 = vmatprep.subr.bf16.mxu1 %v875_v0  ;;  %v326_v16 = vmul.f32 0.70710677, %v315_v5  ;;  %v325_v21 = vmul.f32 0.5, %v315_v5 }
 0x198   :  { %714 = vmatpush3.bf16.msra.mxu1 %v1000_v8  ;;  %v555_v8 = vld [vmem:[%s1089_s6] ss:$0 sm:$0xff] }
 0x199   :  { %715 = vmatprep.subr.bf16.mxu1 %v875_v0 }
 0x19c   :  { %717 = vmatpush3.bf16.msra.mxu1 %v1007_v14 }
 0x19d   :  { %718 = vmatprep.subr.bf16.mxu1 %v875_v0  ;;  %v556_v0 = vld [vmem:[%s1090_s7] ss:$0 sm:$0xff] }
 0x1a0   :  { %720 = vmatpush3.bf16.msra.mxu1 %v1013_v17 }
 0x266   :  { %v293_v11 = vpop.f32.mrb[0].mxu1 }
 0x267   :  { %v297_v12 = vmul.f32 0.03125, %v293_v11  ;;  %v634_v13 = vpop.f32.mrb[1].mxu1 }
 0x269   :  { %v298_v15 = vadd.f32 1e-05, %v297_v12 }
 0x26b   :  { %739 = vrsqrt.f32 %v298_v15 }
 0x26c   :  { %741 = verf.f32 %v326_v16 }
 0x275   :  { %v740_v1 = vpop.eup %739 }
 0x276   :  { %v300_v18 = vmul.f32 %v740_v1, %v222_v9  ;;  %v742_v20 = vpop.eup %741 }
 0x277   :  { %v328_v22 = vadd.f32 1.0, %v742_v20 }
 0x278   :  { %v307_v14 = vmul.f32 %v555_v8, %v300_v18  ;;  %v559_v8 = vld [vmem:[%s1091_s8] ss:$0 sm:$0xff] }
 0x279   :  { %v329_v23 = vmul.f32 %v328_v22, %v325_v21 }
 0x27a   :  { %v314_v17 = vadd.f32 %v556_v0, %v307_v14  ;;  %v560_v0 = vld [vmem:[%s1092_s9] ss:$0 sm:$0xff] }
 0x27b   :  { %v330_v28 = vadd.f32 1.0, %v329_v23 }
 0x27c   :  { %v320_v19 = vmul.f32 0.70710677, %v314_v17  ;;  %v319_v25 = vmul.f32 0.5, %v314_v17 }
 0x27e   :  { %743 = verf.f32 %v320_v19 }
 0x288   :  { %v744_v24 = vpop.eup %743 }
 0x289   :  { %v322_v26 = vadd.f32 1.0, %v744_v24 }
 0x28b   :  { %v323_v27 = vmul.f32 %v322_v26, %v319_v25 }
 0x28d   :  { %v324_v29 = vadd.f32 1.0, %v323_v27 }
 0x28f   :  { %v331_v30 = vmul.f32 %v330_v28, %v324_v29 }
 0x291   :  { %v332_v31 = vsel %vm111_vm1, %v331_v30, 0.0 }
 0x292   :  { %v333_v32 = vrot.slane %v332_v31, 4 }
 0x294   :  { %v334_v33 = vadd.f32 %v333_v32, %v332_v31 }
 0x296   :  { %v335_v34 = vrot.slane %v334_v33, 2 }
 0x298   :  { %v336_v35 = vadd.f32 %v335_v34, %v334_v33 }
 0x29a   :  { %v337_v36 = vrot.slane %v336_v35, 1 }
 0x29c   :  { %v338_v37 = vadd.f32 %v337_v36, %v336_v35 }
 0x29e   :  { %v339_v38 = vmul.f32 %v338_v37, %v324_v29 }
 0x2a0   :  { %v340_v39 = vmul.f32 0.17677669, %v339_v38 }
 0x2a2   :  { %v341_v40 = vsel %vm111_vm1, %v340_v39, -inf }
 0x2a3   :  { %v342_v41 = vrot.slane %v341_v40, 4 }
 0x2a5   :  { %v343_v42 = vmax.f32 %v341_v40, %v342_v41 }
 0x2a7   :  { %v344_v43 = vrot.slane %v343_v42, 2 }
 0x2a9   :  { %v345_v44 = vmax.f32 %v343_v42, %v344_v43 }
 0x2ab   :  { %v346_v45 = vrot.slane %v345_v44, 1 }
 0x2ad   :  { %v347_v46 = vmax.f32 %v345_v44, %v346_v45 }
 0x2af   :  { %v348_v47 = vsub.f32 %v340_v39, %v347_v46 }
 0x2b1   :  { %v349_v48 = vmul.f32 1.442695, %v348_v47 }
 0x2b3   :  { %745 = vpow2.f32 %v349_v48 }
 0x2bd   :  { %v746_v49 = vpop.eup %745 }
 0x2be   :  { %v351_v50 = vsel %vm111_vm1, %v746_v49, 0.0 }
 0x2bf   :  { %v352_v51 = vrot.slane %v351_v50, 4 }
 0x2c1   :  { %v353_v52 = vadd.f32 %v352_v51, %v351_v50 }
 0x2c3   :  { %v354_v53 = vrot.slane %v353_v52, 2 }
 0x2c5   :  { %v355_v54 = vadd.f32 %v354_v53, %v353_v52 }
 0x2c7   :  { %v356_v55 = vrot.slane %v355_v54, 1 }
 0x2c9   :  { %v357_v56 = vadd.f32 %v356_v55, %v355_v54 }
 0x2cb   :  { %747 = vrcp.f32 %v357_v56 }
 0x2d5   :  { %v748_v57 = vpop.eup %747 }
 0x2d6   :  { %v359_v58 = vmul.f32 %v748_v57, %v357_v56 }
 0x2d8   :  { %v360_v59 = vsub.f32 2.0, %v359_v58 }
 0x2da   :  { %v361_v60 = vmul.f32 %v748_v57, %v360_v59 }
 0x2dc   :  { %v362_v61 = vmul.f32 %v361_v60, %v357_v56 }
 0x2de   :  { %v363_v62 = vsub.f32 2.0, %v362_v61 }
 0x2e0   :  { %v364_v63 = vmul.f32 %v363_v62, %v361_v60 }
 0x2e2   :  { %v365_v3 = vmul.f32 %v746_v49, %v364_v63 }
 0x2e4   :  { %v366_v4 = vmul.f32 %v365_v3, %v316_v2 }
 0x2e6   :  { %v367_v6 = vadd.f32 %v366_v4, %v314_v17 }
 0x2e8   :  { %652 = vmatmul.mubr.msk.f32.vlgmr.msra.gmra.mrb[2].mxu0 %vm111_vm1, %v367_v6 }
 0x3bb   :  { %v437_v7 = vpop.f32.mrb[2].mxu0 }
 0x3bc   :  { %v441_v9 = vmul.f32 0.03125, %v437_v7  ;;  %v653_v10 = vpop.f32.mrb[3].mxu0 }
 0x3be   :  { %v442_v11 = vsub.f32 %v367_v6, %v441_v9 }
 0x3c0   :  { %v443_v12 = vmul.f32 %v442_v11, %v442_v11 }
 0x3c2   :  { %671 = vmatmul.mubr.msk.f32.vlgmr.msra.gmra.mrb[2].mxu1 %vm111_vm1, %v443_v12 }
 0x495   :  { %v513_v13 = vpop.f32.mrb[2].mxu1 }
 0x496   :  { %v517_v15 = vmul.f32 0.03125, %v513_v13  ;;  %v672_v5 = vpop.f32.mrb[3].mxu1 }
 0x498   :  { %v518_v16 = vadd.f32 1e-05, %v517_v15 }
 0x49a   :  { %749 = vrsqrt.f32 %v518_v16 }
 0x4a4   :  { %v750_v1 = vpop.eup %749 }
 0x4a5   :  { %v520_v18 = vmul.f32 %v750_v1, %v442_v11 }
 0x4a7   :  { %v527_v14 = vmul.f32 %v559_v8, %v520_v18 }
 0x4a9   :  { %v534_v17 = vadd.f32 %v560_v0, %v527_v14 }
 0x4ab   :  { %535 = vst.msk [vmem:[#allocation10] sm:$0xff] %vm111_vm1, %v534_v17 }
 0x4ac   :  { %850 = shalt.err (!%p847_p8)
}
 0x4ad   :  { %s851_s16 = scalar_lea.hbm %s1093_s10, 128 }
 0x4ae   :  { %p852_p9 = scmp.ne.s32.totalorder %s1093_s10, %s851_s16  ;;  %p855_p10 = scmp.lt.u32.totalorder %s851_s16, %s1093_s10 }
 0x4b0   :  { %p857_p11 = pnand %p855_p10, %p852_p9 }
 0x4b2   :  { %860 = shalt.err (!%p857_p11)
}
 0x4b3   :  { %545 = dma.vmem_to_hbm [thread:$0]  %s543_s28, 128, %s1093_s10, [#allocation4]  }
 0x4b4   :  { %867 = dma.done.wait [#allocation4], 128  }
 0x4b5   :  { %868 = vsyncadd [#allocation4], 4294967168 }
 0x4b6   :  { %549 = vsyncpa [#allocation3], 1 }
 0x4b7   :  { %550 = vsyncpa [#allocation6], 1 }
 0x4b8   :  { %551 = vsyncpa [#allocation9], 1 }
 0x4b9   :  { %552 = vsyncpa [#allocation4], 1 }

</bundles_post_ra>
